<compile_context>
chip_gen: v7x
topology: tpu7x:2x2x1
jax: 0.10.0
libtpu: 0.0.40
codegen_flags: <defaults>
</compile_context>

<pallas_src>
import math
from functools import partial

import jax
import jax.numpy as jnp
from jax.experimental import pallas as pl
from jax.experimental.pallas import tpu as pltpu


def _round_up(v, m):
    return ((v + m - 1) // m) * m


def _plan(B, N, C, S, x_bytes, out_bytes, bb=None):
    """Pick the batch block bb and a VMEM limit from the device budget."""
    lane = 128
    sub = max(8, 32 // out_bytes)            # dtype-aware sublane multiple (f32:8, bf16:16, i8:32)
    try:
        vmem_cap = int(pltpu.get_tpu_info().vmem_capacity_bytes)
    except Exception:
        vmem_cap = 64 * 1024 * 1024          # conservative fallback (v7x-sized)
    budget = int(vmem_cap * 0.70)            # headroom for Mosaic scratch / misc operands

    # Grid-invariant operands (double-buffered by the default pipeline).
    fixed = 2 * (_round_up(N, 8) * _round_up(S, lane) * 4      # W_lin^T (zero row 0)
                 + 8 * _round_up(S, lane) * 4)                 # b_lin
    # Per batch-row VMEM bytes across all blocked operands (x2 for double buffering).
    per_row = 2 * (_round_up(N, 32 // x_bytes) * _round_up(C, lane) * x_bytes   # x tile
                   + _round_up(C, lane) * 4                                     # r
                   + lane * 4                                                   # t
                   + _round_up(S, lane) * out_bytes)                            # out tile

    if bb is None:
        bb = max((budget - fixed) // max(per_row, 1), 1)
        bb = min(bb, 512)
        if bb >= B:
            if B >= 2 * sub:
                # keep >=2 grid blocks so ("parallel",) can shard across both v7x TensorCores
                bb = max(sub, (pl.cdiv(B, 2) // sub) * sub)
            else:
                bb = B           # single block: block dims equal full array -> no alignment issue
        else:
            bb = max(sub, (bb // sub) * sub)

    need = fixed + per_row * bb
    vmem_limit = int(min(vmem_cap * 0.85, max(need + (8 << 20), 48 << 20)))
    return bb, vmem_limit


def cal_soft_origin_pallas(x, params, *, sig=False, bb=None):
    """x: (B, N, C). params: (w_qkv (2C,C), b_qkv (2C,), w_lin (S,S), b_lin (S,))
    with S = soft_dim = N - 1.  Returns (B, S) in x.dtype."""
    B, N, C = x.shape
    S = N - 1
    w_qkv, b_qkv, w_lin, b_lin = params
    assert w_qkv.shape == (2 * C, C) and w_lin.shape == (S, S)

    f32 = jnp.float32
    scale = float(C) ** -0.5
    hi = jax.lax.Precision.HIGHEST

    # ---- hoisted CLS-query projection (N-independent, trivially cheap in XLA) ----
    #   attn[b,0,n] = scale * (q0[b] @ Wk) . x[b,n]  +  scale * q0[b] . b_k
    wq_t = jnp.transpose(w_qkv[:C, :]).astype(f32)        # (C_in, C_out)
    wk = w_qkv[C:, :].astype(f32)                         # (C_out, C_in) torch layout
    b_q = b_qkv[:C].astype(f32)
    b_k = b_qkv[C:].astype(f32)
    q0 = jnp.dot(x[:, 0, :].astype(f32), wq_t, precision=hi) + b_q          # (B, C)
    r = jnp.dot(q0, wk, precision=hi) * scale                               # (B, C)
    t = jnp.sum(q0 * b_k, axis=-1, keepdims=True) * scale                   # (B, 1)

    # Fold the attn[:, 1:] slice into the output linear: zero first row of W_lin^T.
    wl_t = jnp.concatenate(
        [jnp.zeros((1, S), f32), jnp.transpose(w_lin).astype(f32)], axis=0)  # (N, S)
    b_l = b_lin.reshape(1, S).astype(f32)

    out_dtype = x.dtype
    bb, vmem_limit = _plan(B, N, C, S, jnp.dtype(x.dtype).itemsize,
                           jnp.dtype(out_dtype).itemsize, bb=bb)
    n_blk = pl.cdiv(B, bb)   # no padding of x: partial last block is masked by Pallas

    def kernel(x_ref, r_ref, t_ref, wl_ref, bl_ref, o_ref):
        xf = x_ref[...].astype(f32)                                   # (bb, N, C)
        r_b = r_ref[...]                                              # (bb, C) scale folded in
        # attention row 0: VPU multiply + lane reduction (kept off the MXU on purpose,
        # the kernel is bound by the single HBM read of x).
        attn0 = jnp.sum(xf * r_b[:, None, :], axis=-1) + t_ref[...]   # (bb, N)
        out = jnp.dot(attn0, wl_ref[...], preferred_element_type=f32) + bl_ref[...]
        if sig:
            out = jax.nn.sigmoid(out)
        o_ref[...] = out.astype(o_ref.dtype)

    return pl.pallas_call(
        kernel,
        out_shape=jax.ShapeDtypeStruct((B, S), out_dtype),
        grid=(n_blk,),
        in_specs=[
            pl.BlockSpec((bb, N, C), lambda i: (i, 0, 0)),   # x (streamed, HBM-bound)
            pl.BlockSpec((bb, C), lambda i: (i, 0)),         # r: CLS query folded through W_k
            pl.BlockSpec((bb, 1), lambda i: (i, 0)),         # t: key-bias contribution
            pl.BlockSpec((N, S), lambda i: (0, 0)),          # W_lin^T, zero row 0 (VMEM resident)
            pl.BlockSpec((1, S), lambda i: (0, 0)),          # b_lin
        ],
        out_specs=pl.BlockSpec((bb, S), lambda i: (i, 0)),
        compiler_params=pltpu.CompilerParams(
            dimension_semantics=("parallel",),
            vmem_limit_bytes=vmem_limit),
    )(x, r, t, wl_t, b_l)


def make_params(key, dim, soft_dim, qkv_bias=True):
    k1, k2, k3, k4 = jax.random.split(key, 4)
    w_qkv = jax.random.normal(k1, (2 * dim, dim), jnp.float32) * (1.0 / math.sqrt(dim))
    b_qkv = (jax.random.normal(k2, (2 * dim,), jnp.float32) * 0.02
             if qkv_bias else jnp.zeros((2 * dim,), jnp.float32))
    w_lin = jax.random.normal(k3, (soft_dim, soft_dim), jnp.float32) * (1.0 / math.sqrt(soft_dim))
    b_lin = jax.random.normal(k4, (soft_dim,), jnp.float32) * 0.02
    return w_qkv, b_qkv, w_lin, b_lin


def cal_soft_origin_ref(x, params, *, sig=False, num_heads=1):
    """Pure-JAX reference mirroring the PyTorch forward."""
    w_qkv, b_qkv, w_lin, b_lin = params
    B, N, C = x.shape
    scale = float(C) ** -0.5
    with jax.default_matmul_precision("highest"):
        qk = x @ w_qkv.T + b_qkv                                  # (B, N, 2C)
        qk = qk.reshape(B, N, 2, num_heads, C // num_heads)
        qk = jnp.transpose(qk, (2, 0, 3, 1, 4))                   # (2, B, H, N, hd)
        q, k = qk[0], qk[1]
        attn = jnp.matmul(q, jnp.swapaxes(k, -1, -2)) * scale     # (B, H, N, N)
        mask_soft = jnp.squeeze(attn[:, :, 0, 1:], axis=1)        # (B, N-1)
        mask_soft = mask_soft @ w_lin.T + b_lin                   # (B, N-1)
    if sig:
        mask_soft = jax.nn.sigmoid(mask_soft)
    return mask_soft


if __name__ == "__main__":
    # Small ViT-like shapes: 1 CLS token + 16 patch tokens, dim=32, soft_dim=16.
    key = jax.random.PRNGKey(0)
    configs = [
        dict(B=2, N=17, C=32, sig=False, bb=None),
        dict(B=2, N=17, C=32, sig=True, bb=None),
        # Non-divisible batch with a forced small block: exercises the no-pad
        # partial-last-block path (grid = cdiv(12, 8) = 2, last block masked).
        dict(B=12, N=17, C=32, sig=True, bb=8),
    ]
    for cfg in configs:
        B, N, C = cfg["B"], cfg["N"], cfg["C"]
        soft_dim = N - 1
        key, kx, kp = jax.random.split(key, 3)
        x = jax.random.normal(kx, (B, N, C), jnp.float32)
        params = make_params(kp, C, soft_dim, qkv_bias=True)

        fn = jax.jit(partial(cal_soft_origin_pallas, sig=cfg["sig"], bb=cfg["bb"]))
        out = jax.block_until_ready(fn(x, params))
        ref = cal_soft_origin_ref(x, params, sig=cfg["sig"])
        assert out.shape == (B, soft_dim)
        assert jnp.allclose(out, ref, atol=2e-4, rtol=2e-3), f"mismatch vs reference: {cfg}"

    print("KERNEL_OK")
</pallas_src>

<mosaic_0001>
module attributes {stable_mosaic.version = 11 : i64} {
  func.func @kernel(%arg0: i32, %arg1: memref<2x17x32xf32, #tpu.memory_space<vmem>>, %arg2: memref<2x32xf32, #tpu.memory_space<vmem>>, %arg3: memref<2x1xf32, #tpu.memory_space<vmem>>, %arg4: memref<17x16xf32, #tpu.memory_space<vmem>>, %arg5: memref<1x16xf32, #tpu.memory_space<vmem>>, %arg6: memref<2x16xf32, #tpu.memory_space<vmem>>) attributes {dimension_semantics = [#tpu.dimension_semantics<parallel>], iteration_bounds = array<i64: 1>, scalar_prefetch = 0 : i64, scratch_operands = 0 : i64, tpu.core_type = #tpu.core_type<tc>, window_params = [{transform_indices = @transform_0, window_bounds = array<i64: 2, 17, 32>}, {transform_indices = @transform_1, window_bounds = array<i64: 2, 32>}, {transform_indices = @transform_2, window_bounds = array<i64: 2, 1>}, {pipeline_mode = #tpu.pipeline_mode<synchronous>, transform_indices = @transform_3, window_bounds = array<i64: 17, 16>}, {pipeline_mode = #tpu.pipeline_mode<synchronous>, transform_indices = @transform_4, window_bounds = array<i64: 1, 16>}, {transform_indices = @transform_5, window_bounds = array<i64: 2, 16>}]} {
    %c0 = arith.constant 0 : index
    %c0_0 = arith.constant 0 : index
    %c0_1 = arith.constant 0 : index
    %0 = vector.load %arg1[%c0, %c0_0, %c0_1] : memref<2x17x32xf32, #tpu.memory_space<vmem>>, vector<2x17x32xf32>
    %c0_2 = arith.constant 0 : index
    %c0_3 = arith.constant 0 : index
    %1 = vector.load %arg2[%c0_2, %c0_3] : memref<2x32xf32, #tpu.memory_space<vmem>>, vector<2x32xf32>
    %2 = vector.shape_cast %1 : vector<2x32xf32> to vector<2x1x32xf32>
    %3 = vector.broadcast %2 : vector<2x1x32xf32> to vector<2x17x32xf32>
    %4 = arith.mulf %0, %3 : vector<2x17x32xf32>
    %cst = arith.constant dense<0.000000e+00> : vector<2x17xf32>
    %5 = vector.multi_reduction <add>, %4, %cst [2] : vector<2x17x32xf32> to vector<2x17xf32>
    %c0_4 = arith.constant 0 : index
    %c0_5 = arith.constant 0 : index
    %6 = vector.load %arg3[%c0_4, %c0_5] : memref<2x1xf32, #tpu.memory_space<vmem>>, vector<2x1xf32>
    %7 = vector.broadcast %6 : vector<2x1xf32> to vector<2x17xf32>
    %8 = arith.addf %5, %7 : vector<2x17xf32>
    %c0_6 = arith.constant 0 : index
    %c0_7 = arith.constant 0 : index
    %9 = vector.load %arg4[%c0_6, %c0_7] : memref<17x16xf32, #tpu.memory_space<vmem>>, vector<17x16xf32>
    %cst_8 = arith.constant dense<0.000000e+00> : vector<2x16xf32>
    %10 = tpu.matmul %8, %9, %cst_8 {dimension_numbers = #tpu.dot_dimension_numbers<[1], [0], [0], [1], [0, 0, 1, 1], [], []>} : vector<2x17xf32>, vector<17x16xf32>, vector<2x16xf32> -> vector<2x16xf32>
    %c0_9 = arith.constant 0 : index
    %c0_10 = arith.constant 0 : index
    %11 = vector.load %arg5[%c0_9, %c0_10] : memref<1x16xf32, #tpu.memory_space<vmem>>, vector<1x16xf32>
    %12 = vector.broadcast %11 : vector<1x16xf32> to vector<2x16xf32>
    %13 = arith.addf %10, %12 : vector<2x16xf32>
    %c0_11 = arith.constant 0 : index
    %c0_12 = arith.constant 0 : index
    %14 = vector.load %arg6[%c0_11, %c0_12] : memref<2x16xf32, #tpu.memory_space<vmem>>, vector<2x16xf32>
    tpu.vector_store %arg6[%c0_11, %c0_12], %13 {strides = array<i32>} : memref<2x16xf32, #tpu.memory_space<vmem>>, vector<2x16xf32>,
    return
  }
  func.func @transform_0(%arg0: i32) -> (i32, i32, i32) {
    %c0_i32 = arith.constant 0 : i32
    %c0_i32_0 = arith.constant 0 : i32
    %c0_i32_1 = arith.constant 0 : i32
    return %arg0, %c0_i32, %c0_i32_0 : i32, i32, i32
  }
  func.func @transform_1(%arg0: i32) -> (i32, i32) {
    %c0_i32 = arith.constant 0 : i32
    %c0_i32_0 = arith.constant 0 : i32
    return %arg0, %c0_i32 : i32, i32
  }
  func.func @transform_2(%arg0: i32) -> (i32, i32) {
    %c0_i32 = arith.constant 0 : i32
    %c0_i32_0 = arith.constant 0 : i32
    return %arg0, %c0_i32 : i32, i32
  }
  func.func @transform_3(%arg0: i32) -> (i32, i32) {
    %c0_i32 = arith.constant 0 : i32
    %c0_i32_0 = arith.constant 0 : i32
    %c0_i32_1 = arith.constant 0 : i32
    return %c0_i32, %c0_i32_0 : i32, i32
  }
  func.func @transform_4(%arg0: i32) -> (i32, i32) {
    %c0_i32 = arith.constant 0 : i32
    %c0_i32_0 = arith.constant 0 : i32
    %c0_i32_1 = arith.constant 0 : i32
    return %c0_i32, %c0_i32_0 : i32, i32
  }
  func.func @transform_5(%arg0: i32) -> (i32, i32) {
    %c0_i32 = arith.constant 0 : i32
    %c0_i32_0 = arith.constant 0 : i32
    return %arg0, %c0_i32 : i32, i32
  }
}

</mosaic_0001>

<bundles_post_ra>
// kernel: cal_soft_origin_pallas.1
= control target key start
LH: loop header
LB: loop body
LE: loop exit
PB: predicated region body
PF: predicated region fallthrough
CT: control target
= control target key end

     0   :  { %v40_v0 = vlaneseq  ;;  %v323_v1 = vmov 1966171168   ;;  %v324_v5 = vmov 0   ;;  %s417_s0 = inlined_call_operand.vmem [shape: f32[2,17,32], index: 0, kind: input, shape index: {}]   ;;  %s418_s1 = inlined_call_operand.vmem [shape: f32[2,32], index: 1, kind: input, shape index: {}]   ;;  %s419_s2 = inlined_call_operand.vmem [shape: f32[2,1], index: 2, kind: input, shape index: {}]   ;;  %s420_s3 = inlined_call_operand.vmem [shape: f32[17,16], index: 3, kind: input, shape index: {}]   ;;  %s421_s4 = inlined_call_operand.vmem [shape: f32[1,16], index: 4, kind: input, shape index: {}]   ;;  %s422_s5 = inlined_call_operand.hbm [shape: f32[2,16], index: 5, kind: output, shape index: {}]  }
   0x1   :  { %v38_v2 = vunpack.c.l.s4 %v323_v1  ;;  %v271_v4 = vld.sshfl [vmem:[%s418_s1] sm:$0x11 pattern:$0x75316420]  ;;  %297 = vset.pattern.permute.xlu0 %v324_v5  ;;  %298 = vset.pattern.permute.xlu1 %v324_v5 }
   0x2   :  { %v360_v3 = vshrl.u32 %v40_v0, 7 }
   0x3   :  { %10 = vsyncpa [#allocation3], 0  ;;  %v39_v6 = vunpack.c.0.s8 %v38_v2  ;;  %v36_v7 = vcombine.high %v271_v4, %v271_v4  ;;  %v21_v12 = vld [vmem:[%s417_s0] sm:$0xff]  ;;  %v22_v13 = vld [vmem:[%s417_s0 + $0x8] sm:$0xff]  ;;  %vm67_vm0 = vcmask 261120   ;;  %vm74_vm1 = vcmask 253952  }
   0x4   :  { %v53_v9 = vsub.s32 0, %v360_v3  ;;  %v24_v14 = vld [vmem:[%s417_s0 + $0x18] sm:$0xff]  ;;  %v25_v17 = vld [vmem:[%s417_s0 + $0x20] sm:$0xff]  ;;  %v23_v21 = vld [vmem:[%s417_s0 + $0x10] sm:$0x1]  ;;  %v98_v38 = vsub.s32 1, %v360_v3 }
   0x5   :  { %v42_v8 = vsub.s32 %v39_v6, %v360_v3  ;;  %v26_v23 = vld [vmem:[%s417_s0 + $0x28] sm:$0x1]  ;;  %v87_v32 = vld [vmem:[%s419_s2] sm:$0x3]  ;;  %v325_v52 = vmov 0.0|0.0   ;;  %vm181_vm2 = vcmask 1040384  }
   0x6   :  { %v108_v48 = vld [vmem:[%s420_s3] sm:$0xff]  ;;  %v109_v49 = vld [vmem:[%s420_s3 + $0x8] sm:$0xff]  ;;  %288 = vmatprep.subr.bf16.mxu0 %v325_v52  ;;  %v110_v53 = vld [vmem:[%s420_s3 + $0x10] sm:$0x1]  ;;  %v326_v54 = vmov 0.0   ;;  %vm327_vm3 = vmmov 0  }
   0x7   :  { %v43_v10 = vrot.slane %v271_v4, %v42_v8  ;;  %v50_v11 = vrot.slane %v36_v7, %v42_v8  ;;  %v289_v51 = vpack.c.bf16 %v109_v49, %v108_v48  ;;  %285 = vmatprep.mubr.msk.f32.mxu0 %vm327_vm3, %v326_v54  ;;  %v143_v57 = vand.u32 127, %v40_v0  ;;  %s328_s13 = smov [#allocation2]  }
   0x8   :  { %vm153_vm4 = vcmask 130112   ;;  %vm160_vm5 = vcmask 195712   ;;  %vm176_vm6 = vcmask 1041409   ;;  %vm178_vm7 = vcmask 138240   ;;  %s263_s14 = sshll.u32 %s328_s13, 4  ;;  %s264_s14 = int_to_ptr.vmem [resolvable:$true] %s263_s14 }
   0x9   :  { %v54_v15 = vrot.slane %v43_v10, %v53_v9  ;;  %v58_v16 = vrot.slane %v50_v11, %v53_v9  ;;  %290 = vmatpush3.bf16.msra.mxu0 %v289_v51  ;;  %v148_v59 = vadd.s32 4294967288, %v143_v57  ;;  %v155_v60 = vadd.s32 4294967280, %v143_v57  ;;  %s299_s15 = scalar_lea.vmem %s264_s14, 32  ;;  %p304_p1 = scmp.lt.s32.totalorder %s264_s14, %s264_s14 }
   0xa   :  { %283 = vmatprep.subr.mxu0 %v326_v54  ;;  %v146_v1 = vsub.s32 %v143_v57, %v360_v3  ;;  %vm255_vm8 = vcmask 123904   ;;  %p300_p0 = scmp.ne.s32.totalorder %s264_s14, %s299_s15  ;;  %p305_p2 = scmp.lt.s32.totalorder %s299_s15, %s299_s15 }
   0xb   :  { %v61_v18 = vmul.f32 %v54_v15, %v21_v12  ;;  %v62_v19 = vmul.f32 %v54_v15, %v22_v13  ;;  %v64_v20 = vmul.f32 %v58_v16, %v24_v14  ;;  %v65_v22 = vmul.f32 %v58_v16, %v25_v17 }
   0xc   :  { %v63_v27 = vmul.f32 %v54_v15, %v23_v21  ;;  %v66_v29 = vmul.f32 %v58_v16, %v26_v23  ;;  %v151_v62 = vsub.s32 %v148_v59, %v360_v3  ;;  %v158_v63 = vsub.s32 %v155_v60, %v360_v3  ;;  %v272_v3 = vld [vmem:[%s421_s4] ss:$0 sm:$0xff]  ;;  %p306_p3 = por %p305_p2, %p304_p1 }
   0xd   :  { %v68_v24 = vsel %vm67_vm0, %v61_v18, 0.0  ;;  %v78_v25 = vsel %vm67_vm0, %v64_v20, 0.0  ;;  %v71_v26 = vsel %vm67_vm0, %v62_v19, 0.0  ;;  %v81_v28 = vsel %vm67_vm0, %v65_v22, 0.0  ;;  %284 = vmatpush3.msk.msra.mxu0 %vm181_vm2, %v110_v53 }
   0xe   :  { %69 = vadd.xlane.f32.xlu0 %v68_v24  ;;  %79 = vadd.xlane.f32.xlu1 %v78_v25  ;;  %v75_v30 = vsel %vm74_vm1, %v63_v27, 0.0  ;;  %v84_v31 = vsel %vm74_vm1, %v66_v29, 0.0  ;;  %p307_p4 = pnand %p306_p3, %p300_p0 }
  0x12   :  { %72 = vadd.xlane.f32.xlu0 %v71_v26  ;;  %82 = vadd.xlane.f32.xlu1 %v81_v28 }
  0x16   :  { %76 = vadd.xlane.f32.xlu0 %v75_v30  ;;  %85 = vadd.xlane.f32.xlu1 %v84_v31 }
  0x2c   :  { %90 = vperm.xlu0 %297, %v87_v32  }
  0x9b   :  { %v70_v33 = vpop.xlane.xlu0 %69  ;;  %v80_v42 = vpop.xlane.xlu1 %79 }
  0x9f   :  { %v73_v34 = vpop.xlane.xlu0 %72  ;;  %v83_v44 = vpop.xlane.xlu1 %82 }
  0xa3   :  { %v77_v35 = vpop.xlane.xlu0 %76  ;;  %v86_v47 = vpop.xlane.xlu1 %85 }
  0xab   :  { %v91_v36 = vpop.permute.xlu0 %90 }
  0xac   :  { %v95_v37 = vrot.slane %v91_v36, %v53_v9  ;;  %v99_v40 = vrot.slane %v91_v36, %v98_v38 }
  0xae   :  { %v102_v39 = vadd.f32 %v95_v37, %v70_v33  ;;  %v103_v41 = vadd.f32 %v95_v37, %v73_v34  ;;  %v105_v43 = vadd.f32 %v99_v40, %v80_v42  ;;  %v106_v45 = vadd.f32 %v99_v40, %v83_v44 }
  0xaf   :  { %v104_v46 = vadd.f32 %v95_v37, %v77_v35  ;;  %v107_v50 = vadd.f32 %v99_v40, %v86_v47 }
  0xb0   :  { %125 = vperm.xlu1 %298, %v102_v39  }
  0xb4   :  { %128 = vperm.xlu1 %298, %v103_v41  }
  0xb8   :  { %134 = vperm.xlu1 %298, %v105_v43  }
  0xbc   :  { %137 = vperm.xlu1 %298, %v106_v45  }
  0xc0   :  { %131 = vperm.xlu1 %298, %v104_v46  }
  0xc4   :  { %140 = vperm.xlu1 %298, %v107_v50  }
 0x12f   :  { %v126_v55 = vpop.permute.xlu1 %125 }
 0x130   :  { %v147_v7 = vrot.slane %v126_v55, %v146_v1 }
 0x133   :  { %v129_v56 = vpop.permute.xlu1 %128 }
 0x134   :  { %v152_v4 = vrot.slane %v129_v56, %v151_v62 }
 0x136   :  { %v154_v10 = vsel %vm153_vm4, %v152_v4, %v147_v7 }
 0x137   :  { %v135_v58 = vpop.permute.xlu1 %134 }
 0x138   :  { %v165_v8 = vrot.slane %v135_v58, %v146_v1 }
 0x13b   :  { %v138_v61 = vpop.permute.xlu1 %137 }
 0x13c   :  { %v169_v5 = vrot.slane %v138_v61, %v151_v62 }
 0x13e   :  { %v170_v11 = vsel %vm153_vm4, %v169_v5, %v165_v8 }
 0x13f   :  { %v132_v2 = vpop.permute.xlu1 %131 }
 0x140   :  { %v159_v6 = vrot.slane %v132_v2, %v158_v63 }
 0x142   :  { %v161_v12 = vsel %vm160_vm5, %v159_v6, %v154_v10 }
 0x143   :  { %v141_v9 = vpop.permute.xlu1 %140 }
 0x144   :  { %v174_v0 = vrot.slane %v141_v9, %v158_v63 }
 0x146   :  { %v175_v13 = vsel %vm160_vm5, %v174_v0, %v170_v11 }
 0x147   :  { %v177_v14 = vsel %vm176_vm6, %v175_v13, %v161_v12 }
 0x148   :  { %286 = vmatmul.mubr.msk.f32.vlgmr.msra.gmra.mrb[0].mxu0 %vm178_vm7, %v177_v14 }
 0x21b   :  { %v251_v15 = vpop.f32.mrb[0].mxu0 }
 0x21c   :  { %v252_v16 = vadd.f32 %v272_v3, %v251_v15  ;;  %v287_v17 = vpop.f32.mrb[1].mxu0 }
 0x21e   :  { %256 = vst.msk [vmem:[#allocation2] sm:$0x3] %vm255_vm8, %v252_v16 }
 0x21f   :  { %310 = shalt.err (!%p307_p4)
}
 0x220   :  { %s311_s18 = scalar_lea.hbm %s422_s5, 32 }
 0x221   :  { %p312_p5 = scmp.ne.s32.totalorder %s422_s5, %s311_s18  ;;  %p315_p6 = scmp.lt.u32.totalorder %s311_s18, %s422_s5 }
 0x223   :  { %p317_p7 = pnand %p315_p6, %p312_p5 }
 0x225   :  { %320 = shalt.err (!%p317_p7)
}
 0x226   :  { %266 = dma.vmem_to_hbm [thread:$0]  %s264_s14, 32, %s422_s5, [#allocation3]  }
 0x227   :  { %321 = dma.done.wait [#allocation3], 32  }
 0x228   :  { %322 = vsyncadd [#allocation3], 4294967264 }
 0x229   :  { %270 = vsyncpa [#allocation3], 1 }

</bundles_post_ra>
